<compile_context>
chip_gen: v6e
topology: v6e:2x2x1
jax: 0.10.0
libtpu: 0.0.40
codegen_flags: <defaults>
</compile_context>

<pallas_src>
import functools

import numpy as np
import jax
import jax.numpy as jnp
from jax.experimental import pallas as pl
from jax.experimental.pallas import tpu as pltpu


def _round_up(x, m):
    return ((x + m - 1) // m) * m


# ----------------------------------------------------------------------------
# Pallas kernel: per-chunk partial sums
# ----------------------------------------------------------------------------
def _dice_partial_kernel(o_ref, t_ref, inter_ref, prob_ref, targ_ref, *,
                         rows, tiles_per_chunk, tm, need_mask):
    """One (tm, 128) tile of the fused Dice-loss reduction.

    o_ref, t_ref            : (tm, 128) tiles of logits / targets (native dtype).
    inter/prob/targ_ref     : (1, 8, 128) f32 per-chunk partial-sum outputs,
                              resident across the inner grid axis.
    """
    p_id = pl.program_id(0)          # chunk (parallel axis)
    i = pl.program_id(1)             # tile within chunk (arbitrary axis)

    @pl.when(i == 0)
    def _init():
        inter_ref[...] = jnp.zeros_like(inter_ref)
        prob_ref[...] = jnp.zeros_like(prob_ref)
        targ_ref[...] = jnp.zeros_like(targ_ref)

    # Up-cast narrow inputs to f32 in-register; HBM traffic stays narrow.
    o = o_ref[...].astype(jnp.float32)           # (tm, 128)
    t = t_ref[...].astype(jnp.float32)           # (tm, 128)
    p = jax.nn.sigmoid(o)                        # EUP path, f32

    if need_mask:
        # Zero rows past the end of the (unpadded) input: the last / clamped
        # tile may contain undefined data beyond the array bound.
        row0 = (p_id * tiles_per_chunk + i) * tm
        row_ids = row0 + jax.lax.broadcasted_iota(jnp.int32, (tm, 128), 0)
        valid = row_ids < rows
        p = jnp.where(valid, p, 0.0)
        t = jnp.where(valid, t, 0.0)

    # Full-vreg (8,128) partial sums: pure VALU vreg adds; cross-sublane and
    # cross-lane reductions deferred to the wrapper epilogue.
    g = tm // 8
    inter_ref[0] += jnp.sum((p * t).reshape(g, 8, 128), axis=0)
    prob_ref[0] += jnp.sum(p.reshape(g, 8, 128), axis=0)
    targ_ref[0] += jnp.sum(t.reshape(g, 8, 128), axis=0)


# ----------------------------------------------------------------------------
# Wrapper
# ----------------------------------------------------------------------------
def dice_loss(outputs, targets, smooth=1.0, *, tile_rows=None, num_chunks=2):
    """Dice loss matching PyTorch DiceLoss.forward (sigmoid applied to outputs)."""
    assert outputs.shape == targets.shape, (outputs.shape, targets.shape)
    lanes = 128
    n = int(np.prod(outputs.shape))
    smooth = float(smooth)

    if n == 0:
        # 1 - (0 + smooth) / (0 + 0 + smooth) == 0 (for smooth != 0).
        return jnp.float32(0.0)

    o_flat = jnp.reshape(outputs, (-1,))
    t_flat = jnp.reshape(targets, (-1,))

    rows = n // lanes              # full 128-lane rows handled by the kernel
    n_main = rows * lanes

    # Tail (< 128 elements): trivially small pure-JAX path. Keeps the kernel
    # inputs a zero-copy reshape of the originals (no pad/cast copy in HBM).
    if n_main < n:
        p_tail = jax.nn.sigmoid(o_flat[n_main:].astype(jnp.float32))
        t_tail = t_flat[n_main:].astype(jnp.float32)
        inter = jnp.sum(p_tail * t_tail)
        psum = jnp.sum(p_tail)
        tsum = jnp.sum(t_tail)
    else:
        inter = jnp.float32(0.0)
        psum = jnp.float32(0.0)
        tsum = jnp.float32(0.0)

    if rows > 0:
        o2 = o_flat[:n_main].reshape(rows, lanes)   # native dtype, no copy
        t2 = t_flat[:n_main].reshape(rows, lanes)

        # ~2 MiB per input block in its native dtype; multiple of 8 sublanes.
        if tile_rows is None:
            itemsize = max(int(jnp.dtype(o2.dtype).itemsize), 1)
            tile_rows = (2 * 1024 * 1024) // (lanes * itemsize)
        tm = max(8, min(_round_up(int(tile_rows), 8), _round_up(rows, 8)))

        num_tiles = pl.cdiv(rows, tm)
        n_chunks = max(1, min(int(num_chunks), num_tiles))
        tiles_per_chunk = pl.cdiv(num_tiles, n_chunks)
        # Mask only if the last tile is ragged or some (chunk, tile) slots are
        # clamped duplicates of the final block.
        need_mask = (rows % tm != 0) or (n_chunks * tiles_per_chunk != num_tiles)

        def in_map(p, i):
            return (jnp.minimum(p * tiles_per_chunk + i, num_tiles - 1), 0)

        def out_map(p, i):
            return (p, 0, 0)

        kernel = functools.partial(
            _dice_partial_kernel,
            rows=rows, tiles_per_chunk=tiles_per_chunk, tm=tm, need_mask=need_mask)

        acc_shape = jax.ShapeDtypeStruct((n_chunks, 8, lanes), jnp.float32)
        in_bytes = n_main * (jnp.dtype(o2.dtype).itemsize
                             + jnp.dtype(t2.dtype).itemsize)
        inter_p, prob_p, targ_p = pl.pallas_call(
            kernel,
            out_shape=(acc_shape, acc_shape, acc_shape),
            grid=(n_chunks, tiles_per_chunk),
            in_specs=[
                pl.BlockSpec((tm, lanes), in_map),
                pl.BlockSpec((tm, lanes), in_map),
            ],
            out_specs=(
                pl.BlockSpec((1, 8, lanes), out_map),
                pl.BlockSpec((1, 8, lanes), out_map),
                pl.BlockSpec((1, 8, lanes), out_map),
            ),
            compiler_params=pltpu.CompilerParams(
                dimension_semantics=("parallel", "arbitrary"),
            ),
            cost_estimate=pl.CostEstimate(
                flops=5 * n_main,
                transcendentals=n_main,
                bytes_accessed=in_bytes + 3 * n_chunks * 8 * lanes * 4,
            ),
        )(o2, t2)

        # Tiny epilogue: cross-vreg reductions over (n_chunks, 8, 128) slabs.
        inter = inter + jnp.sum(inter_p)
        psum = psum + jnp.sum(prob_p)
        tsum = tsum + jnp.sum(targ_p)

    dice = (2.0 * inter + smooth) / (psum + tsum + smooth)
    return 1.0 - dice


def dice_loss_ref(outputs, targets, smooth=1.0):
    """Pure-JAX reference, literal transcription of the PyTorch module."""
    p = jax.nn.sigmoid(outputs.astype(jnp.float32)).reshape(-1)
    t = targets.astype(jnp.float32).reshape(-1)
    intersection = jnp.sum(p * t)
    dice = (2.0 * intersection + smooth) / (jnp.sum(p) + jnp.sum(t) + smooth)
    return 1.0 - dice


# ----------------------------------------------------------------------------
# Demo / self-test
# ----------------------------------------------------------------------------
if __name__ == "__main__":
    key = jax.random.PRNGKey(0)
    k1, k2, k3, k4, k5, k6 = jax.random.split(key, 6)

    loss_fn = jax.jit(dice_loss)

    # Primary: small segmentation-head logits / binary targets (NCHW).
    outputs = jax.random.normal(k1, (2, 4, 16, 16), jnp.float32)
    targets = jax.random.bernoulli(k2, 0.5, (2, 4, 16, 16)).astype(jnp.float32)
    loss = jax.block_until_ready(loss_fn(outputs, targets))
    ref = jax.block_until_ready(dice_loss_ref(outputs, targets))
    assert loss.shape == ()
    assert bool(jnp.isfinite(loss))
    assert abs(float(loss) - float(ref)) < 1e-5, (float(loss), float(ref))

    # Ragged size + native bf16 inputs (exercises in-kernel mask, tail path,
    # and in-register up-cast of narrow dtypes).
    o2 = jax.random.normal(k3, (3, 5, 7, 11), jnp.bfloat16)
    t2 = jax.random.bernoulli(k4, 0.3, (3, 5, 7, 11)).astype(jnp.bfloat16)
    l2 = jax.block_until_ready(loss_fn(o2, t2))
    r2 = jax.block_until_ready(dice_loss_ref(o2, t2))
    assert abs(float(l2) - float(r2)) < 1e-4, (float(l2), float(r2))

    # Multi-tile / two-chunk path (exercises the parallel outer axis and the
    # resident per-chunk accumulators over multiple inner steps).
    o3 = jax.random.normal(k5, (2, 4, 32, 32), jnp.float32)
    t3 = jax.random.bernoulli(k6, 0.5, (2, 4, 32, 32)).astype(jnp.float32)
    small_fn = jax.jit(functools.partial(dice_loss, tile_rows=16, num_chunks=2))
    l3 = jax.block_until_ready(small_fn(o3, t3))
    r3 = jax.block_until_ready(dice_loss_ref(o3, t3))
    assert abs(float(l3) - float(r3)) < 1e-5, (float(l3), float(r3))

    print("KERNEL_OK")
</pallas_src>

<mosaic_0001>
module attributes {stable_mosaic.version = 11 : i64} {
  func.func @_dice_partial_kernel(%arg0: i32, %arg1: i32, %arg2: memref<16x128xf32, #tpu.memory_space<vmem>>, %arg3: memref<16x128xf32, #tpu.memory_space<vmem>>, %arg4: memref<1x8x128xf32, #tpu.memory_space<vmem>>, %arg5: memref<1x8x128xf32, #tpu.memory_space<vmem>>, %arg6: memref<1x8x128xf32, #tpu.memory_space<vmem>>) attributes {dimension_semantics = [#tpu.dimension_semantics<parallel>, #tpu.dimension_semantics<arbitrary>], iteration_bounds = array<i64: 1, 1>, scalar_prefetch = 0 : i64, scratch_operands = 0 : i64, tpu.core_type = #tpu.core_type<tc>, window_params = [{transform_indices = @transform_0, window_bounds = array<i64: 16, 128>}, {transform_indices = @transform_1, window_bounds = array<i64: 16, 128>}, {transform_indices = @transform_2, window_bounds = array<i64: 1, 8, 128>}, {transform_indices = @transform_3, window_bounds = array<i64: 1, 8, 128>}, {transform_indices = @transform_4, window_bounds = array<i64: 1, 8, 128>}]} {
    %c0_i32 = arith.constant 0 : i32
    %0 = arith.cmpi eq, %arg1, %c0_i32 : i32
    %1 = arith.extui %0 : i1 to i32
    %c0_i32_0 = arith.constant 0 : i32
    %2 = arith.cmpi ne, %1, %c0_i32_0 : i32
    scf.if %2 {
      %cst_25 = arith.constant 0.000000e+00 : f32
      %35 = vector.broadcast %cst_25 : f32 to vector<1x8x128xf32>
      %c0_26 = arith.constant 0 : index
      %c0_27 = arith.constant 0 : index
      %c0_28 = arith.constant 0 : index
      %36 = vector.load %arg4[%c0_26, %c0_27, %c0_28] : memref<1x8x128xf32, #tpu.memory_space<vmem>>, vector<1x8x128xf32>
      tpu.vector_store %arg4[%c0_26, %c0_27, %c0_28], %35 {strides = array<i32>} : memref<1x8x128xf32, #tpu.memory_space<vmem>>, vector<1x8x128xf32>,
      %cst_29 = arith.constant 0.000000e+00 : f32
      %37 = vector.broadcast %cst_29 : f32 to vector<1x8x128xf32>
      %c0_30 = arith.constant 0 : index
      %c0_31 = arith.constant 0 : index
      %c0_32 = arith.constant 0 : index
      %38 = vector.load %arg5[%c0_30, %c0_31, %c0_32] : memref<1x8x128xf32, #tpu.memory_space<vmem>>, vector<1x8x128xf32>
      tpu.vector_store %arg5[%c0_30, %c0_31, %c0_32], %37 {strides = array<i32>} : memref<1x8x128xf32, #tpu.memory_space<vmem>>, vector<1x8x128xf32>,
      %cst_33 = arith.constant 0.000000e+00 : f32
      %39 = vector.broadcast %cst_33 : f32 to vector<1x8x128xf32>
      %c0_34 = arith.constant 0 : index
      %c0_35 = arith.constant 0 : index
      %c0_36 = arith.constant 0 : index
      %40 = vector.load %arg6[%c0_34, %c0_35, %c0_36] : memref<1x8x128xf32, #tpu.memory_space<vmem>>, vector<1x8x128xf32>
      tpu.vector_store %arg6[%c0_34, %c0_35, %c0_36], %39 {strides = array<i32>} : memref<1x8x128xf32, #tpu.memory_space<vmem>>, vector<1x8x128xf32>,
    } else {
    }
    %c0 = arith.constant 0 : index
    %c0_1 = arith.constant 0 : index
    %3 = vector.load %arg2[%c0, %c0_1] : memref<16x128xf32, #tpu.memory_space<vmem>>, vector<16x128xf32>
    %c0_2 = arith.constant 0 : index
    %c0_3 = arith.constant 0 : index
    %4 = vector.load %arg3[%c0_2, %c0_3] : memref<16x128xf32, #tpu.memory_space<vmem>>, vector<16x128xf32>
    %5 = arith.negf %3 : vector<16x128xf32>
    %6 = math.exp %5 : vector<16x128xf32>
    %cst = arith.constant 1.000000e+00 : f32
    %7 = vector.broadcast %cst : f32 to vector<16x128xf32>
    %8 = arith.addf %7, %6 : vector<16x128xf32>
    %9 = arith.divf %7, %8 : vector<16x128xf32>
    %c0_4 = arith.constant 0 : index
    %c0_5 = arith.constant 0 : index
    %c0_6 = arith.constant 0 : index
    %10 = vector.load %arg4[%c0_4, %c0_5, %c0_6] : memref<1x8x128xf32, #tpu.memory_space<vmem>>, vector<1x8x128xf32>
    %11 = vector.shape_cast %10 : vector<1x8x128xf32> to vector<8x128xf32>
    %12 = arith.mulf %9, %4 : vector<16x128xf32>
    %13 = vector.shape_cast %12 : vector<16x128xf32> to vector<2x8x128xf32>
    %cst_7 = arith.constant dense<0.000000e+00> : vector<8x128xf32>
    %14 = vector.multi_reduction <add>, %13, %cst_7 [0] : vector<2x8x128xf32> to vector<8x128xf32>
    %15 = arith.addf %11, %14 : vector<8x128xf32>
    %c0_8 = arith.constant 0 : index
    %c0_9 = arith.constant 0 : index
    %c0_10 = arith.constant 0 : index
    %16 = vector.load %arg4[%c0_8, %c0_9, %c0_10] : memref<1x8x128xf32, #tpu.memory_space<vmem>>, vector<1x8x128xf32>
    %17 = vector.shape_cast %16 : vector<1x8x128xf32> to vector<8x128xf32>
    %18 = vector.shape_cast %15 : vector<8x128xf32> to vector<1x8x128xf32>
    tpu.vector_store %arg4[%c0_8, %c0_9, %c0_10], %18 {strides = array<i32>} : memref<1x8x128xf32, #tpu.memory_space<vmem>>, vector<1x8x128xf32>,
    %c0_11 = arith.constant 0 : index
    %c0_12 = arith.constant 0 : index
    %c0_13 = arith.constant 0 : index
    %19 = vector.load %arg5[%c0_11, %c0_12, %c0_13] : memref<1x8x128xf32, #tpu.memory_space<vmem>>, vector<1x8x128xf32>
    %20 = vector.shape_cast %19 : vector<1x8x128xf32> to vector<8x128xf32>
    %21 = vector.shape_cast %9 : vector<16x128xf32> to vector<2x8x128xf32>
    %cst_14 = arith.constant dense<0.000000e+00> : vector<8x128xf32>
    %22 = vector.multi_reduction <add>, %21, %cst_14 [0] : vector<2x8x128xf32> to vector<8x128xf32>
    %23 = arith.addf %20, %22 : vector<8x128xf32>
    %c0_15 = arith.constant 0 : index
    %c0_16 = arith.constant 0 : index
    %c0_17 = arith.constant 0 : index
    %24 = vector.load %arg5[%c0_15, %c0_16, %c0_17] : memref<1x8x128xf32, #tpu.memory_space<vmem>>, vector<1x8x128xf32>
    %25 = vector.shape_cast %24 : vector<1x8x128xf32> to vector<8x128xf32>
    %26 = vector.shape_cast %23 : vector<8x128xf32> to vector<1x8x128xf32>
    tpu.vector_store %arg5[%c0_15, %c0_16, %c0_17], %26 {strides = array<i32>} : memref<1x8x128xf32, #tpu.memory_space<vmem>>, vector<1x8x128xf32>,
    %c0_18 = arith.constant 0 : index
    %c0_19 = arith.constant 0 : index
    %c0_20 = arith.constant 0 : index
    %27 = vector.load %arg6[%c0_18, %c0_19, %c0_20] : memref<1x8x128xf32, #tpu.memory_space<vmem>>, vector<1x8x128xf32>
    %28 = vector.shape_cast %27 : vector<1x8x128xf32> to vector<8x128xf32>
    %29 = vector.shape_cast %4 : vector<16x128xf32> to vector<2x8x128xf32>
    %cst_21 = arith.constant dense<0.000000e+00> : vector<8x128xf32>
    %30 = vector.multi_reduction <add>, %29, %cst_21 [0] : vector<2x8x128xf32> to vector<8x128xf32>
    %31 = arith.addf %28, %30 : vector<8x128xf32>
    %c0_22 = arith.constant 0 : index
    %c0_23 = arith.constant 0 : index
    %c0_24 = arith.constant 0 : index
    %32 = vector.load %arg6[%c0_22, %c0_23, %c0_24] : memref<1x8x128xf32, #tpu.memory_space<vmem>>, vector<1x8x128xf32>
    %33 = vector.shape_cast %32 : vector<1x8x128xf32> to vector<8x128xf32>
    %34 = vector.shape_cast %31 : vector<8x128xf32> to vector<1x8x128xf32>
    tpu.vector_store %arg6[%c0_22, %c0_23, %c0_24], %34 {strides = array<i32>} : memref<1x8x128xf32, #tpu.memory_space<vmem>>, vector<1x8x128xf32>,
    return
  }
  func.func @transform_0(%arg0: i32, %arg1: i32) -> (i32, i32) {
    %c1_i32 = arith.constant 1 : i32
    %0 = arith.muli %arg0, %c1_i32 : i32
    %1 = arith.addi %0, %arg1 : i32
    %c0_i32 = arith.constant 0 : i32
    %2 = arith.minsi %1, %c0_i32 : i32
    %c0_i32_0 = arith.constant 0 : i32
    %c0_i32_1 = arith.constant 0 : i32
    return %2, %c0_i32_0 : i32, i32
  }
  func.func @transform_1(%arg0: i32, %arg1: i32) -> (i32, i32) {
    %c1_i32 = arith.constant 1 : i32
    %0 = arith.muli %arg0, %c1_i32 : i32
    %1 = arith.addi %0, %arg1 : i32
    %c0_i32 = arith.constant 0 : i32
    %2 = arith.minsi %1, %c0_i32 : i32
    %c0_i32_0 = arith.constant 0 : i32
    %c0_i32_1 = arith.constant 0 : i32
    return %2, %c0_i32_0 : i32, i32
  }
  func.func @transform_2(%arg0: i32, %arg1: i32) -> (i32, i32, i32) {
    %c0_i32 = arith.constant 0 : i32
    %c0_i32_0 = arith.constant 0 : i32
    %c0_i32_1 = arith.constant 0 : i32
    return %arg0, %c0_i32, %c0_i32_0 : i32, i32, i32
  }
  func.func @transform_3(%arg0: i32, %arg1: i32) -> (i32, i32, i32) {
    %c0_i32 = arith.constant 0 : i32
    %c0_i32_0 = arith.constant 0 : i32
    %c0_i32_1 = arith.constant 0 : i32
    return %arg0, %c0_i32, %c0_i32_0 : i32, i32, i32
  }
  func.func @transform_4(%arg0: i32, %arg1: i32) -> (i32, i32, i32) {
    %c0_i32 = arith.constant 0 : i32
    %c0_i32_0 = arith.constant 0 : i32
    %c0_i32_1 = arith.constant 0 : i32
    return %arg0, %c0_i32, %c0_i32_0 : i32, i32, i32
  }
}

</mosaic_0001>

<bundles_post_ra>
// kernel: dice_loss.1
= control target key start
LH: loop header
LB: loop body
LE: loop exit
PB: predicated region body
PF: predicated region fallthrough
CT: control target
= control target key end

     0   :  { %s196_s0 = inlined_call_operand.vmem [shape: f32[16,128], index: 0, kind: input, shape index: {}]   ;;  %s197_s1 = inlined_call_operand.vmem [shape: f32[16,128], index: 1, kind: input, shape index: {}]   ;;  %s198_s4 = inlined_call_operand.vmem [shape: f32[1,8,128], index: 4, kind: output, shape index: {2}]   ;;  %s199_s3 = inlined_call_operand.vmem [shape: f32[1,8,128], index: 3, kind: output, shape index: {1}]   ;;  %s200_s2 = inlined_call_operand.vmem [shape: f32[1,8,128], index: 2, kind: output, shape index: {0}]  }
   0x1   :  { %v85_v0 = vld [vmem:[%s196_s0] sm:$0xff]  ;;  %v86_v1 = vld [vmem:[%s196_s0 + $0x8] sm:$0xff] }
   0x2   :  { %v87_v2 = vld [vmem:[%s197_s1] sm:$0xff]  ;;  %v88_v3 = vld [vmem:[%s197_s1 + $0x8] sm:$0xff]  ;;  %v139_v4 = vmul.f32 -1.442695, %v85_v0  ;;  %v140_v5 = vmul.f32 -1.442695, %v86_v1 }
   0x3   :  { %v112_v6 = vadd.f32 %v88_v3, %v87_v2 }
   0x4   :  { %142 = vpow2.f32 %v139_v4 }
   0x5   :  { %144 = vpow2.f32 %v140_v5  ;;  %114 = vst [vmem:[%s198_s4] sm:$0xff] %v112_v6 }
  0x11   :  { %v143_v7 = vpop.eup %142 }
  0x12   :  { %v145_v8 = vpop.eup %144  ;;  %v95_v9 = vadd.f32 1.0, %v143_v7 }
  0x13   :  { %v96_v10 = vadd.f32 1.0, %v145_v8 }
  0x14   :  { %146 = vrcp.f32 %v95_v9 }
  0x15   :  { %148 = vrcp.f32 %v96_v10 }
  0x21   :  { %v147_v11 = vpop.eup %146 }
  0x22   :  { %v149_v12 = vpop.eup %148  ;;  %v102_v13 = vmul.f32 %v147_v11, %v87_v2 }
  0x23   :  { %v103_v14 = vmul.f32 %v149_v12, %v88_v3  ;;  %v108_v15 = vadd.f32 %v149_v12, %v147_v11 }
  0x25   :  { %v104_v16 = vadd.f32 %v103_v14, %v102_v13  ;;  %110 = vst [vmem:[%s199_s3] sm:$0xff] %v108_v15 }
  0x27   :  { %106 = vst [vmem:[%s200_s2] sm:$0xff] %v104_v16 }

</bundles_post_ra>
